<compile_context>
chip_gen: v5e
topology: v5e:2x2
jax: 0.10.0
libtpu: 0.0.40
codegen_flags: <defaults>
</compile_context>

<pallas_src>
import math
import functools

import jax
import jax.numpy as jnp
import numpy as np
from jax import lax
from jax.experimental import pallas as pl
from jax.experimental.pallas import tpu as pltpu

# ----------------------------- config -----------------------------
CFG = dict(
    emb_dim=32,
    context_length=8,
    n_heads=4,
    drop_rate=0.0,   # dropout is identity at inference
    qkv_bias=False,
)
EPS = 1e-5
_BF16 = jnp.bfloat16


def _gelu_tanh(x):
    # GELU (tanh approximation), as in the reference FeedForward's GELU module.
    return 0.5 * x * (1.0 + jnp.tanh(
        jnp.sqrt(2.0 / jnp.pi) * (x + 0.044715 * x * x * x)))


def _layernorm(v, scale, shift):
    # LayerNorm over last dim, biased variance, eps=1e-5 (matches reference LayerNorm).
    mean = jnp.mean(v, axis=-1, keepdims=True)
    var = jnp.mean((v - mean) ** 2, axis=-1, keepdims=True)
    return (v - mean) * lax.rsqrt(var + EPS) * scale + shift


# ----------------------------- kernel -----------------------------
def transformer_block_kernel(
    x_ref,                      # (1, T, D) f32 -- one batch element per grid step
    ln1_s_ref, ln1_b_ref,       # (1, D) f32
    wqkv_ref,                   # (3D, D) bf16: [Wq^T * 1/sqrt(hd); Wk^T; Wv^T]
    wo_ref, bo_ref,             # (D, D) bf16 (in, out), (1, D) f32
    ln2_s_ref, ln2_b_ref,       # (1, D) f32
    w1_ref, b1_ref,             # (D, 4D) bf16, (1, 4D) f32
    w2_ref, b2_ref,             # (4D, D) bf16, (1, D) f32
    out_ref,                    # (1, T, D) f32
    *, num_heads,
):
    f32 = jnp.float32
    x = x_ref[0]                         # (T, D) fp32
    T, D = x.shape
    H = num_heads
    hd = D // H

    # ---- norm1 (fp32 elementwise) ----
    xn = _layernorm(x, ln1_s_ref[...], ln1_b_ref[...])                    # (T, D)

    # ---- fused QKV projection: ONE matmul, computed transposed ----
    xn_t = xn.astype(_BF16).T                                             # (D, T) bf16 (cast before transpose)
    qkv_t = jnp.dot(wqkv_ref[...], xn_t, preferred_element_type=f32)      # (3D, T) f32
    qkv_bf = qkv_t.astype(_BF16)                                          # cast once before relayouts

    # ---- head split via tile-aligned sublane slices ----
    qh   = qkv_bf[0:D].reshape(H, hd, T).transpose(0, 2, 1)               # (H, T, hd)
    kh_t = qkv_bf[D:2 * D].reshape(H, hd, T)                              # (H, hd, T)
    vh_t = qkv_bf[2 * D:3 * D].reshape(H, hd, T)                          # (H, hd, T)

    # ---- per-sequence causal mask (no cross-batch blocks) ----
    row = lax.broadcasted_iota(jnp.int32, (T, T), 0)
    col = lax.broadcasted_iota(jnp.int32, (T, T), 1)
    causal = col <= row

    # 1/sqrt(hd) is already folded into Wq (host-side), so no score-tensor scaling here.
    s = jnp.einsum("htk,hks->hts", qh, kh_t, preferred_element_type=f32)  # (H, T, T)
    s = jnp.where(causal[None, :, :], s, -1e30)
    m = jnp.max(s, axis=-1, keepdims=True)
    e = jnp.exp(s - m)                                                    # fp32
    p = e * pl.reciprocal(jnp.sum(e, axis=-1, keepdims=True), approx=True)

    ctx_t = jnp.einsum("hks,hts->hkt", vh_t, p.astype(_BF16),
                       preferred_element_type=f32)                        # (H, hd, T)
    ctx = ctx_t.astype(_BF16).reshape(D, T).T                             # (T, D) bf16 (cast before transpose)

    attn_out = jnp.dot(ctx, wo_ref[...], preferred_element_type=f32) + bo_ref[...]
    x1 = x + attn_out                    # residual 1 (drop_shortcut is identity)

    # ---- norm2 + feed-forward (hidden is lane-dense: 4D = 128 lanes) ----
    xn2 = _layernorm(x1, ln2_s_ref[...], ln2_b_ref[...])
    h1 = jnp.dot(xn2.astype(_BF16), w1_ref[...],
                 preferred_element_type=f32) + b1_ref[...]                # (T, 4D)
    h1 = _gelu_tanh(h1)                                                   # fp32
    ff = jnp.dot(h1.astype(_BF16), w2_ref[...],
                 preferred_element_type=f32) + b2_ref[...]                # (T, D)

    out_ref[0] = x1 + ff                 # residual 2


# ----------------------------- wrapper -----------------------------
def transformer_block(x, params, *, num_heads):
    B, T, D = x.shape
    H4 = 4 * D
    hd = D // num_heads
    scale = 1.0 / math.sqrt(hd)

    x = x.astype(jnp.float32)

    # Host-side (one-time, free) weight prep:
    #  * Wq/Wk/Wv transposed to (out, in), fused into one (3D, D) weight, with the
    #    attention scale folded into Wq.
    #  * all matmul weights cast to bf16 once; biases / LN params stay fp32 and all
    #    accumulation inside the kernel is fp32.
    wqkv_t = jnp.concatenate(
        [params["wq"].T * scale, params["wk"].T, params["wv"].T], axis=0
    ).astype(_BF16)                                   # (3D, D)
    wo = params["wo"].astype(_BF16)
    w1 = params["w1"].astype(_BF16)
    w2 = params["w2"].astype(_BF16)

    kernel = functools.partial(transformer_block_kernel, num_heads=num_heads)

    def resident(shape):
        zeros = (0,) * len(shape)
        return pl.BlockSpec(shape, lambda b: zeros)   # same block every step -> DMA'd once

    out = pl.pallas_call(
        kernel,
        out_shape=jax.ShapeDtypeStruct((B, T, D), jnp.float32),
        grid=(B,),                                    # one sequence per grid step
        in_specs=[
            pl.BlockSpec((1, T, D), lambda b: (b, 0, 0)),    # x
            resident((1, D)), resident((1, D)),              # ln1 scale/shift
            resident((3 * D, D)),                            # fused QKV^T (bf16)
            resident((D, D)), resident((1, D)),              # Wo (bf16), bo
            resident((1, D)), resident((1, D)),              # ln2 scale/shift
            resident((D, H4)), resident((1, H4)),            # W1 (bf16), b1
            resident((H4, D)), resident((1, D)),             # W2 (bf16), b2
        ],
        out_specs=pl.BlockSpec((1, T, D), lambda b: (b, 0, 0)),
        compiler_params=pltpu.CompilerParams(
            dimension_semantics=("parallel",)),       # batch axis shards across v7x's 2 TCs
    )(x,
      params["ln1_scale"], params["ln1_shift"],
      wqkv_t,
      wo, params["bo"],
      params["ln2_scale"], params["ln2_shift"],
      w1, params["b1"],
      w2, params["b2"])

    return out


# ----------------------------- pure-JAX fp32 reference -----------------------------
def reference(x, p, *, num_heads):
    B, T, D = x.shape
    hd = D // num_heads

    xn = _layernorm(x, p["ln1_scale"], p["ln1_shift"])
    q = xn @ p["wq"]
    k = xn @ p["wk"]
    v = xn @ p["wv"]
    q = q.reshape(B, T, num_heads, hd).transpose(0, 2, 1, 3)
    k = k.reshape(B, T, num_heads, hd).transpose(0, 2, 1, 3)
    v = v.reshape(B, T, num_heads, hd).transpose(0, 2, 1, 3)
    s = jnp.einsum("bhtd,bhsd->bhts", q, k) / math.sqrt(hd)
    mask = jnp.triu(jnp.ones((T, T), bool), k=1)
    s = jnp.where(mask, -1e30, s)
    a = jax.nn.softmax(s, axis=-1)
    ctx = jnp.einsum("bhts,bhsd->bhtd", a, v).transpose(0, 2, 1, 3).reshape(B, T, D)
    attn_out = ctx @ p["wo"] + p["bo"]
    x1 = x + attn_out
    xn2 = _layernorm(x1, p["ln2_scale"], p["ln2_shift"])
    hdn = _gelu_tanh(xn2 @ p["w1"] + p["b1"])
    return x1 + hdn @ p["w2"] + p["b2"]


# ----------------------------- main -----------------------------
if __name__ == "__main__":
    D = CFG["emb_dim"]
    T = CFG["context_length"]
    B = 2
    H = 4 * D

    key = jax.random.PRNGKey(0)
    ks = jax.random.split(key, 8)

    # Deterministic synthetic parameters (linear weights stored (in, out) so the
    # reference computes y = x @ W + b; the wrapper handles transposes/fusion/casts).
    params = dict(
        ln1_scale=jnp.ones((1, D), jnp.float32),
        ln1_shift=jnp.zeros((1, D), jnp.float32),
        wq=jax.random.normal(ks[0], (D, D), jnp.float32) * 0.05,
        wk=jax.random.normal(ks[1], (D, D), jnp.float32) * 0.05,
        wv=jax.random.normal(ks[2], (D, D), jnp.float32) * 0.05,
        wo=jax.random.normal(ks[3], (D, D), jnp.float32) * 0.05,
        bo=jnp.zeros((1, D), jnp.float32),
        ln2_scale=jnp.ones((1, D), jnp.float32),
        ln2_shift=jnp.zeros((1, D), jnp.float32),
        w1=jax.random.normal(ks[4], (D, H), jnp.float32) * 0.05,
        b1=jnp.zeros((1, H), jnp.float32),
        w2=jax.random.normal(ks[5], (H, D), jnp.float32) * 0.05,
        b2=jnp.zeros((1, D), jnp.float32),
    )

    x = jax.random.normal(ks[6], (B, T, D), jnp.float32)

    out = transformer_block(x, params, num_heads=CFG["n_heads"])
    out = jax.block_until_ready(out)

    ref = reference(x, params, num_heads=CFG["n_heads"])
    # Tolerance accounts for bf16 matmul operands (fp32 accumulation) and the
    # approx-reciprocal softmax; elementwise math and residuals remain exact fp32.
    np.testing.assert_allclose(np.asarray(out), np.asarray(ref), rtol=2e-2, atol=2e-2)

    print("KERNEL_OK")
</pallas_src>

<mosaic_0001>
module attributes {stable_mosaic.version = 11 : i64} {
  func.func @transformer_block_kernel(%arg0: i32, %arg1: memref<1x8x32xf32, #tpu.memory_space<vmem>>, %arg2: memref<1x32xf32, #tpu.memory_space<vmem>>, %arg3: memref<1x32xf32, #tpu.memory_space<vmem>>, %arg4: memref<96x32xbf16, #tpu.memory_space<vmem>>, %arg5: memref<32x32xbf16, #tpu.memory_space<vmem>>, %arg6: memref<1x32xf32, #tpu.memory_space<vmem>>, %arg7: memref<1x32xf32, #tpu.memory_space<vmem>>, %arg8: memref<1x32xf32, #tpu.memory_space<vmem>>, %arg9: memref<32x128xbf16, #tpu.memory_space<vmem>>, %arg10: memref<1x128xf32, #tpu.memory_space<vmem>>, %arg11: memref<128x32xbf16, #tpu.memory_space<vmem>>, %arg12: memref<1x32xf32, #tpu.memory_space<vmem>>, %arg13: memref<1x8x32xf32, #tpu.memory_space<vmem>>) attributes {dimension_semantics = [#tpu.dimension_semantics<parallel>], iteration_bounds = array<i64: 2>, scalar_prefetch = 0 : i64, scratch_operands = 0 : i64, tpu.core_type = #tpu.core_type<tc>, window_params = [{transform_indices = @transform_0, window_bounds = array<i64: 1, 8, 32>}, {pipeline_mode = #tpu.pipeline_mode<synchronous>, transform_indices = @transform_1, window_bounds = array<i64: 1, 32>}, {pipeline_mode = #tpu.pipeline_mode<synchronous>, transform_indices = @transform_2, window_bounds = array<i64: 1, 32>}, {pipeline_mode = #tpu.pipeline_mode<synchronous>, transform_indices = @transform_3, window_bounds = array<i64: 96, 32>}, {pipeline_mode = #tpu.pipeline_mode<synchronous>, transform_indices = @transform_4, window_bounds = array<i64: 32, 32>}, {pipeline_mode = #tpu.pipeline_mode<synchronous>, transform_indices = @transform_5, window_bounds = array<i64: 1, 32>}, {pipeline_mode = #tpu.pipeline_mode<synchronous>, transform_indices = @transform_6, window_bounds = array<i64: 1, 32>}, {pipeline_mode = #tpu.pipeline_mode<synchronous>, transform_indices = @transform_7, window_bounds = array<i64: 1, 32>}, {pipeline_mode = #tpu.pipeline_mode<synchronous>, transform_indices = @transform_8, window_bounds = array<i64: 32, 128>}, {pipeline_mode = #tpu.pipeline_mode<synchronous>, transform_indices = @transform_9, window_bounds = array<i64: 1, 128>}, {pipeline_mode = #tpu.pipeline_mode<synchronous>, transform_indices = @transform_10, window_bounds = array<i64: 128, 32>}, {pipeline_mode = #tpu.pipeline_mode<synchronous>, transform_indices = @transform_11, window_bounds = array<i64: 1, 32>}, {transform_indices = @transform_12, window_bounds = array<i64: 1, 8, 32>}]} {
    %c0 = arith.constant 0 : index
    %c0_0 = arith.constant 0 : index
    %c0_1 = arith.constant 0 : index
    %0 = vector.load %arg1[%c0, %c0_0, %c0_1] : memref<1x8x32xf32, #tpu.memory_space<vmem>>, vector<1x8x32xf32>
    %1 = vector.shape_cast %0 : vector<1x8x32xf32> to vector<8x32xf32>
    %c0_2 = arith.constant 0 : index
    %c0_3 = arith.constant 0 : index
    %2 = vector.load %arg2[%c0_2, %c0_3] : memref<1x32xf32, #tpu.memory_space<vmem>>, vector<1x32xf32>
    %c0_4 = arith.constant 0 : index
    %c0_5 = arith.constant 0 : index
    %3 = vector.load %arg3[%c0_4, %c0_5] : memref<1x32xf32, #tpu.memory_space<vmem>>, vector<1x32xf32>
    %cst = arith.constant dense<0.000000e+00> : vector<8xf32>
    %4 = vector.multi_reduction <add>, %1, %cst [1] : vector<8x32xf32> to vector<8xf32>
    %5 = vector.shape_cast %4 : vector<8xf32> to vector<8x1xf32>
    %cst_6 = arith.constant 3.200000e+01 : f32
    %6 = vector.broadcast %cst_6 : f32 to vector<8x1xf32>
    %7 = arith.divf %5, %6 : vector<8x1xf32>
    %8 = vector.broadcast %7 : vector<8x1xf32> to vector<8x32xf32>
    %9 = arith.subf %1, %8 : vector<8x32xf32>
    %10 = arith.mulf %9, %9 : vector<8x32xf32>
    %cst_7 = arith.constant dense<0.000000e+00> : vector<8xf32>
    %11 = vector.multi_reduction <add>, %10, %cst_7 [1] : vector<8x32xf32> to vector<8xf32>
    %12 = vector.shape_cast %11 : vector<8xf32> to vector<8x1xf32>
    %cst_8 = arith.constant 3.200000e+01 : f32
    %13 = vector.broadcast %cst_8 : f32 to vector<8x1xf32>
    %14 = arith.divf %12, %13 : vector<8x1xf32>
    %15 = vector.broadcast %7 : vector<8x1xf32> to vector<8x32xf32>
    %16 = arith.subf %1, %15 : vector<8x32xf32>
    %cst_9 = arith.constant 9.99999974E-6 : f32
    %17 = vector.broadcast %cst_9 : f32 to vector<8x1xf32>
    %18 = arith.addf %14, %17 : vector<8x1xf32>
    %19 = math.rsqrt %18 : vector<8x1xf32>
    %20 = vector.broadcast %19 : vector<8x1xf32> to vector<8x32xf32>
    %21 = arith.mulf %16, %20 : vector<8x32xf32>
    %22 = vector.broadcast %2 : vector<1x32xf32> to vector<8x32xf32>
    %23 = arith.mulf %21, %22 : vector<8x32xf32>
    %24 = vector.broadcast %3 : vector<1x32xf32> to vector<8x32xf32>
    %25 = arith.addf %23, %24 : vector<8x32xf32>
    %26 = arith.truncf %25 : vector<8x32xf32> to vector<8x32xbf16>
    %27 = tpu.transpose %26, [1, 0] : vector<8x32xbf16> -> vector<32x8xbf16>
    %c0_10 = arith.constant 0 : index
    %c0_11 = arith.constant 0 : index
    %28 = vector.load %arg4[%c0_10, %c0_11] : memref<96x32xbf16, #tpu.memory_space<vmem>>, vector<96x32xbf16>
    %cst_12 = arith.constant dense<0.000000e+00> : vector<96x8xf32>
    %29 = tpu.matmul %28, %27, %cst_12 {dimension_numbers = #tpu.dot_dimension_numbers<[1], [0], [0], [1], [0, 0, 1, 1], [], []>} : vector<96x32xbf16>, vector<32x8xbf16>, vector<96x8xf32> -> vector<96x8xf32>
    %30 = arith.truncf %29 : vector<96x8xf32> to vector<96x8xbf16>
    %31 = vector.extract_strided_slice %30 {offsets = [0, 0], sizes = [32, 8], strides = [1, 1]} : vector<96x8xbf16> to vector<32x8xbf16>
    %32 = vector.shape_cast %31 : vector<32x8xbf16> to vector<4x8x8xbf16>
    %33 = tpu.transpose %32, [0, 2, 1] : vector<4x8x8xbf16> -> vector<4x8x8xbf16>
    %34 = vector.extract_strided_slice %30 {offsets = [32, 0], sizes = [32, 8], strides = [1, 1]} : vector<96x8xbf16> to vector<32x8xbf16>
    %35 = vector.shape_cast %34 : vector<32x8xbf16> to vector<4x8x8xbf16>
    %36 = vector.extract_strided_slice %30 {offsets = [64, 0], sizes = [32, 8], strides = [1, 1]} : vector<96x8xbf16> to vector<32x8xbf16>
    %37 = vector.shape_cast %36 : vector<32x8xbf16> to vector<4x8x8xbf16>
    %38 = tpu.iota {dimensions = array<i32: 0>} : vector<8x8xi32>
    %39 = tpu.iota {dimensions = array<i32: 1>} : vector<8x8xi32>
    %40 = arith.cmpi sle, %39, %38 : vector<8x8xi32>
    "tpu.trace_start"() <{level = 10 : i32, message = "htk,hks->hts"}> : () -> ()
    %cst_13 = arith.constant dense<0.000000e+00> : vector<4x8x8xf32>
    %41 = tpu.matmul %33, %35, %cst_13 {dimension_numbers = #tpu.dot_dimension_numbers<[2], [1], [1], [2], [0, 0, 0, 1, 1, 2], [0], [0]>} : vector<4x8x8xbf16>, vector<4x8x8xbf16>, vector<4x8x8xf32> -> vector<4x8x8xf32>
    "tpu.trace_stop"() : () -> ()
    %42 = vector.shape_cast %40 : vector<8x8xi1> to vector<1x8x8xi1>
    %cst_14 = arith.constant -1.000000e+30 : f32
    %43 = vector.shape_cast %42 : vector<1x8x8xi1> to vector<1x8x8xi1>
    %44 = vector.broadcast %43 : vector<1x8x8xi1> to vector<4x8x8xi1>
    %45 = vector.broadcast %cst_14 : f32 to vector<4x8x8xf32>
    %46 = arith.select %44, %41, %45 : vector<4x8x8xi1>, vector<4x8x8xf32>
    %cst_15 = arith.constant dense<0xFF800000> : vector<4x8xf32>
    %47 = vector.multi_reduction <maximumf>, %46, %cst_15 [2] : vector<4x8x8xf32> to vector<4x8xf32>
    %48 = vector.shape_cast %47 : vector<4x8xf32> to vector<4x8x1xf32>
    %49 = vector.broadcast %48 : vector<4x8x1xf32> to vector<4x8x8xf32>
    %50 = arith.subf %46, %49 : vector<4x8x8xf32>
    %51 = math.exp %50 : vector<4x8x8xf32>
    %cst_16 = arith.constant dense<0.000000e+00> : vector<4x8xf32>
    %52 = vector.multi_reduction <add>, %51, %cst_16 [2] : vector<4x8x8xf32> to vector<4x8xf32>
    %53 = vector.shape_cast %52 : vector<4x8xf32> to vector<4x8x1xf32>
    %54 = tpu.reciprocal %53 {approx = true} : vector<4x8x1xf32> -> vector<4x8x1xf32>
    %55 = vector.broadcast %54 : vector<4x8x1xf32> to vector<4x8x8xf32>
    %56 = arith.mulf %51, %55 : vector<4x8x8xf32>
    %57 = arith.truncf %56 : vector<4x8x8xf32> to vector<4x8x8xbf16>
    "tpu.trace_start"() <{level = 10 : i32, message = "hks,hts->hkt"}> : () -> ()
    %cst_17 = arith.constant dense<0.000000e+00> : vector<4x8x8xf32>
    %58 = tpu.matmul %37, %57, %cst_17 {dimension_numbers = #tpu.dot_dimension_numbers<[2], [2], [1], [1], [0, 0, 0, 1, 1, 1], [0], [0]>} : vector<4x8x8xbf16>, vector<4x8x8xbf16>, vector<4x8x8xf32> -> vector<4x8x8xf32>
    "tpu.trace_stop"() : () -> ()
    %59 = arith.truncf %58 : vector<4x8x8xf32> to vector<4x8x8xbf16>
    %60 = vector.shape_cast %59 : vector<4x8x8xbf16> to vector<32x8xbf16>
    %61 = tpu.transpose %60, [1, 0] : vector<32x8xbf16> -> vector<8x32xbf16>
    %c0_18 = arith.constant 0 : index
    %c0_19 = arith.constant 0 : index
    %62 = vector.load %arg5[%c0_18, %c0_19] : memref<32x32xbf16, #tpu.memory_space<vmem>>, vector<32x32xbf16>
    %cst_20 = arith.constant dense<0.000000e+00> : vector<8x32xf32>
    %63 = tpu.matmul %61, %62, %cst_20 {dimension_numbers = #tpu.dot_dimension_numbers<[1], [0], [0], [1], [0, 0, 1, 1], [], []>} : vector<8x32xbf16>, vector<32x32xbf16>, vector<8x32xf32> -> vector<8x32xf32>
    %c0_21 = arith.constant 0 : index
    %c0_22 = arith.constant 0 : index
    %64 = vector.load %arg6[%c0_21, %c0_22] : memref<1x32xf32, #tpu.memory_space<vmem>>, vector<1x32xf32>
    %65 = vector.broadcast %64 : vector<1x32xf32> to vector<8x32xf32>
    %66 = arith.addf %63, %65 : vector<8x32xf32>
    %67 = arith.addf %1, %66 : vector<8x32xf32>
    %c0_23 = arith.constant 0 : index
    %c0_24 = arith.constant 0 : index
    %68 = vector.load %arg7[%c0_23, %c0_24] : memref<1x32xf32, #tpu.memory_space<vmem>>, vector<1x32xf32>
    %c0_25 = arith.constant 0 : index
    %c0_26 = arith.constant 0 : index
    %69 = vector.load %arg8[%c0_25, %c0_26] : memref<1x32xf32, #tpu.memory_space<vmem>>, vector<1x32xf32>
    %cst_27 = arith.constant dense<0.000000e+00> : vector<8xf32>
    %70 = vector.multi_reduction <add>, %67, %cst_27 [1] : vector<8x32xf32> to vector<8xf32>
    %71 = vector.shape_cast %70 : vector<8xf32> to vector<8x1xf32>
    %cst_28 = arith.constant 3.200000e+01 : f32
    %72 = vector.broadcast %cst_28 : f32 to vector<8x1xf32>
    %73 = arith.divf %71, %72 : vector<8x1xf32>
    %74 = vector.broadcast %73 : vector<8x1xf32> to vector<8x32xf32>
    %75 = arith.subf %67, %74 : vector<8x32xf32>
    %76 = arith.mulf %75, %75 : vector<8x32xf32>
    %cst_29 = arith.constant dense<0.000000e+00> : vector<8xf32>
    %77 = vector.multi_reduction <add>, %76, %cst_29 [1] : vector<8x32xf32> to vector<8xf32>
    %78 = vector.shape_cast %77 : vector<8xf32> to vector<8x1xf32>
    %cst_30 = arith.constant 3.200000e+01 : f32
    %79 = vector.broadcast %cst_30 : f32 to vector<8x1xf32>
    %80 = arith.divf %78, %79 : vector<8x1xf32>
    %81 = vector.broadcast %73 : vector<8x1xf32> to vector<8x32xf32>
    %82 = arith.subf %67, %81 : vector<8x32xf32>
    %cst_31 = arith.constant 9.99999974E-6 : f32
    %83 = vector.broadcast %cst_31 : f32 to vector<8x1xf32>
    %84 = arith.addf %80, %83 : vector<8x1xf32>
    %85 = math.rsqrt %84 : vector<8x1xf32>
    %86 = vector.broadcast %85 : vector<8x1xf32> to vector<8x32xf32>
    %87 = arith.mulf %82, %86 : vector<8x32xf32>
    %88 = vector.broadcast %68 : vector<1x32xf32> to vector<8x32xf32>
    %89 = arith.mulf %87, %88 : vector<8x32xf32>
    %90 = vector.broadcast %69 : vector<1x32xf32> to vector<8x32xf32>
    %91 = arith.addf %89, %90 : vector<8x32xf32>
    %92 = arith.truncf %91 : vector<8x32xf32> to vector<8x32xbf16>
    %c0_32 = arith.constant 0 : index
    %c0_33 = arith.constant 0 : index
    %93 = vector.load %arg9[%c0_32, %c0_33] : memref<32x128xbf16, #tpu.memory_space<vmem>>, vector<32x128xbf16>
    %cst_34 = arith.constant dense<0.000000e+00> : vector<8x128xf32>
    %94 = tpu.matmul %92, %93, %cst_34 {dimension_numbers = #tpu.dot_dimension_numbers<[1], [0], [0], [1], [0, 0, 1, 1], [], []>} : vector<8x32xbf16>, vector<32x128xbf16>, vector<8x128xf32> -> vector<8x128xf32>
    %c0_35 = arith.constant 0 : index
    %c0_36 = arith.constant 0 : index
    %95 = vector.load %arg10[%c0_35, %c0_36] : memref<1x128xf32, #tpu.memory_space<vmem>>, vector<1x128xf32>
    %96 = vector.broadcast %95 : vector<1x128xf32> to vector<8x128xf32>
    %97 = arith.addf %94, %96 : vector<8x128xf32>
    %cst_37 = arith.constant 5.000000e-01 : f32
    %98 = vector.broadcast %cst_37 : f32 to vector<8x128xf32>
    %99 = arith.mulf %98, %97 : vector<8x128xf32>
    %cst_38 = arith.constant 0.636619746 : f32
    %100 = math.sqrt %cst_38 : f32
    %cst_39 = arith.constant 4.471500e-02 : f32
    %101 = vector.broadcast %cst_39 : f32 to vector<8x128xf32>
    %102 = arith.mulf %101, %97 : vector<8x128xf32>
    %103 = arith.mulf %102, %97 : vector<8x128xf32>
    %104 = arith.mulf %103, %97 : vector<8x128xf32>
    %105 = arith.addf %97, %104 : vector<8x128xf32>
    %106 = vector.broadcast %100 : f32 to vector<8x128xf32>
    %107 = arith.mulf %106, %105 : vector<8x128xf32>
    %108 = math.tanh %107 : vector<8x128xf32>
    %cst_40 = arith.constant 1.000000e+00 : f32
    %109 = vector.broadcast %cst_40 : f32 to vector<8x128xf32>
    %110 = arith.addf %109, %108 : vector<8x128xf32>
    %111 = arith.mulf %99, %110 : vector<8x128xf32>
    %112 = arith.truncf %111 : vector<8x128xf32> to vector<8x128xbf16>
    %c0_41 = arith.constant 0 : index
    %c0_42 = arith.constant 0 : index
    %113 = vector.load %arg11[%c0_41, %c0_42] : memref<128x32xbf16, #tpu.memory_space<vmem>>, vector<128x32xbf16>
    %cst_43 = arith.constant dense<0.000000e+00> : vector<8x32xf32>
    %114 = tpu.matmul %112, %113, %cst_43 {dimension_numbers = #tpu.dot_dimension_numbers<[1], [0], [0], [1], [0, 0, 1, 1], [], []>} : vector<8x128xbf16>, vector<128x32xbf16>, vector<8x32xf32> -> vector<8x32xf32>
    %c0_44 = arith.constant 0 : index
    %c0_45 = arith.constant 0 : index
    %115 = vector.load %arg12[%c0_44, %c0_45] : memref<1x32xf32, #tpu.memory_space<vmem>>, vector<1x32xf32>
    %116 = vector.broadcast %115 : vector<1x32xf32> to vector<8x32xf32>
    %117 = arith.addf %114, %116 : vector<8x32xf32>
    %118 = arith.addf %67, %117 : vector<8x32xf32>
    %c0_46 = arith.constant 0 : index
    %c0_47 = arith.constant 0 : index
    %c0_48 = arith.constant 0 : index
    %119 = vector.load %arg13[%c0_46, %c0_47, %c0_48] : memref<1x8x32xf32, #tpu.memory_space<vmem>>, vector<1x8x32xf32>
    %120 = vector.shape_cast %119 : vector<1x8x32xf32> to vector<8x32xf32>
    %121 = vector.shape_cast %118 : vector<8x32xf32> to vector<1x8x32xf32>
    tpu.vector_store %arg13[%c0_46, %c0_47, %c0_48], %121 {strides = array<i32>} : memref<1x8x32xf32, #tpu.memory_space<vmem>>, vector<1x8x32xf32>,
    return
  }
  func.func @transform_0(%arg0: i32) -> (i32, i32, i32) {
    %c0_i32 = arith.constant 0 : i32
    %c0_i32_0 = arith.constant 0 : i32
    %c0_i32_1 = arith.constant 0 : i32
    return %arg0, %c0_i32, %c0_i32_0 : i32, i32, i32
  }
  func.func @transform_1(%arg0: i32) -> (i32, i32) {
    %c0_i32 = arith.constant 0 : i32
    %c0_i32_0 = arith.constant 0 : i32
    %c0_i32_1 = arith.constant 0 : i32
    return %c0_i32, %c0_i32_0 : i32, i32
  }
  func.func @transform_2(%arg0: i32) -> (i32, i32) {
    %c0_i32 = arith.constant 0 : i32
    %c0_i32_0 = arith.constant 0 : i32
    %c0_i32_1 = arith.constant 0 : i32
    return %c0_i32, %c0_i32_0 : i32, i32
  }
  func.func @transform_3(%arg0: i32) -> (i32, i32) {
    %c0_i32 = arith.constant 0 : i32
    %c0_i32_0 = arith.constant 0 : i32
    %c0_i32_1 = arith.constant 0 : i32
    return %c0_i32, %c0_i32_0 : i32, i32
  }
  func.func @transform_4(%arg0: i32) -> (i32, i32) {
    %c0_i32 = arith.constant 0 : i32
    %c0_i32_0 = arith.constant 0 : i32
    %c0_i32_1 = arith.constant 0 : i32
    return %c0_i32, %c0_i32_0 : i32, i32
  }
  func.func @transform_5(%arg0: i32) -> (i32, i32) {
    %c0_i32 = arith.constant 0 : i32
    %c0_i32_0 = arith.constant 0 : i32
    %c0_i32_1 = arith.constant 0 : i32
    return %c0_i32, %c0_i32_0 : i32, i32
  }
  func.func @transform_6(%arg0: i32) -> (i32, i32) {
    %c0_i32 = arith.constant 0 : i32
    %c0_i32_0 = arith.constant 0 : i32
    %c0_i32_1 = arith.constant 0 : i32
    return %c0_i32, %c0_i32_0 : i32, i32
  }
  func.func @transform_7(%arg0: i32) -> (i32, i32) {
    %c0_i32 = arith.constant 0 : i32
    %c0_i32_0 = arith.constant 0 : i32
    %c0_i32_1 = arith.constant 0 : i32
    return %c0_i32, %c0_i32_0 : i32, i32
  }
  func.func @transform_8(%arg0: i32) -> (i32, i32) {
    %c0_i32 = arith.constant 0 : i32
    %c0_i32_0 = arith.constant 0 : i32
    %c0_i32_1 = arith.constant 0 : i32
    return %c0_i32, %c0_i32_0 : i32, i32
  }
  func.func @transform_9(%arg0: i32) -> (i32, i32) {
    %c0_i32 = arith.constant 0 : i32
    %c0_i32_0 = arith.constant 0 : i32
    %c0_i32_1 = arith.constant 0 : i32
    return %c0_i32, %c0_i32_0 : i32, i32
  }
  func.func @transform_10(%arg0: i32) -> (i32, i32) {
    %c0_i32 = arith.constant 0 : i32
    %c0_i32_0 = arith.constant 0 : i32
    %c0_i32_1 = arith.constant 0 : i32
    return %c0_i32, %c0_i32_0 : i32, i32
  }
  func.func @transform_11(%arg0: i32) -> (i32, i32) {
    %c0_i32 = arith.constant 0 : i32
    %c0_i32_0 = arith.constant 0 : i32
    %c0_i32_1 = arith.constant 0 : i32
    return %c0_i32, %c0_i32_0 : i32, i32
  }
  func.func @transform_12(%arg0: i32) -> (i32, i32, i32) {
    %c0_i32 = arith.constant 0 : i32
    %c0_i32_0 = arith.constant 0 : i32
    %c0_i32_1 = arith.constant 0 : i32
    return %arg0, %c0_i32, %c0_i32_0 : i32, i32, i32
  }
}

</mosaic_0001>

<bundles_post_ra>
// kernel: tpu_custom_call.1
= control target key start
LH: loop header
LB: loop body
LE: loop exit
PB: predicated region body
PF: predicated region fallthrough
CT: control target
= control target key end

     0   :  { %s1700_s0 = inlined_call_operand.vmem [shape: f32[2,8,32], index: 0, kind: input, shape index: {}]   ;;  %s1701_s1 = inlined_call_operand.vmem [shape: f32[1,32], index: 1, kind: input, shape index: {}]   ;;  %s1702_s2 = inlined_call_operand.vmem [shape: f32[1,32], index: 2, kind: input, shape index: {}]   ;;  %s1703_s3 = inlined_call_operand.vmem [shape: bf16[96,32], index: 3, kind: input, shape index: {}]   ;;  %s1704_s4 = inlined_call_operand.vmem [shape: bf16[32,32], index: 4, kind: input, shape index: {}]   ;;  %s1705_s5 = inlined_call_operand.vmem [shape: f32[1,32], index: 5, kind: input, shape index: {}]   ;;  %s1706_s6 = inlined_call_operand.vmem [shape: f32[1,32], index: 6, kind: input, shape index: {}]   ;;  %s1707_s7 = inlined_call_operand.vmem [shape: f32[1,32], index: 7, kind: input, shape index: {}]   ;;  %s1708_s8 = inlined_call_operand.vmem [shape: bf16[32,128], index: 8, kind: input, shape index: {}]   ;;  %s1709_s9 = inlined_call_operand.vmem [shape: f32[1,128], index: 9, kind: input, shape index: {}]   ;;  %s1710_s10 = inlined_call_operand.vmem [shape: bf16[128,32], index: 10, kind: input, shape index: {}]   ;;  %s1711_s11 = inlined_call_operand.vmem [shape: f32[1,32], index: 11, kind: input, shape index: {}]   ;;  %s1712_s12 = inlined_call_operand.hbm [shape: f32[2,8,32], index: 12, kind: output, shape index: {}]  }
   0x1   :  { %1713 = sst [smem:[#allocation5_spill]] %s1700_s0 }
   0x2   :  { %1714 = sst [smem:[#allocation6_spill]] %s1701_s1 }
   0x3   :  { %1715 = sst [smem:[#allocation7_spill]] %s1702_s2 }
   0x4   :  { %17 = vsyncpa [#allocation3], 0 }
   0x5   :  { %19 = vsyncpa [#allocation3 + $0x1], 0  ;;  %s1474_s21 = smov 0   ;;  %s1476_s22 = smov 0  }
   0x6   :  { %s1478_s23 = smov 0   ;;  %s1480_s24 = smov 0  }
   0x7 LB: > { %s1495_s25 = sadd.s32 4294967295, %s1406_s24   ;;  %s1149_s26 = sadd.s32 4294967294, %s1406_s24   ;;  %s1406_s24 = sphi %s1480_s24, %s1724_s24   ;;  %s1402_s23 = sphi %s1478_s23, %s1723_s23   ;;  %s1398_s22 = sphi %s1476_s22, %s1722_s22   ;;  %s1394_s21 = sphi %s1474_s21, %s1721_s21  }
   0x8   : > { %s1499_s27 = sadd.s32 1, %s1406_s24   ;;  %s289_s28 = sadd.s32 1, %s1402_s23 }
   0x9   : > { %s286_s29 = ssub.s32 %s1406_s24, %s1499_s27  ;;  %p299_p0 = scmp.ne.s32.totalorder %s1402_s23, %s1398_s22 }
   0xa   : > { %p287_p1 = scmp.eq.s32.totalorder %s286_s29, 0  ;;  %p300_p2 = scmp.eq.s32.totalorder %s1495_s25, 1 }
   0xb   : > { %p305_p3 = scmp.ne.s32.totalorder %s1398_s22, %s1394_s21  ;;  %p306_p4 = scmp.eq.s32.totalorder %s1149_s26, 1 }
   0xc   : > { %s1510_s30 = scalar_select %p287_p1, %s1402_s23, %s289_s28  }
   0xd   : > { %p1512_p5 = por %p300_p2, %p299_p0  ;;  %p1516_p6 = por %p306_p4, %p305_p3 }
   0xe   : > { %p1152_p7 = scmp.ge.s32.totalorder %s1406_s24, 1  ;;  %p364_p8 = scmp.lt.s32.totalorder %s1406_s24, 3 }
  0x10   : > { %p365_p9 = pnand %p1152_p7, %p364_p8 }
  0x11   : > { %p405_p10 = scmp.lt.s32.totalorder (!%p365_p9), %s1495_s25, 1  ;;  %s1718_s0 = sld [smem:[#allocation5_spill]] (!%p365_p9) }
  0x12   : > { %368 = sbr.rel (%p365_p9) target bundleno = 2017 (0x7e1), region = 68  ;;  %s1719_s1 = sld [smem:[#allocation6_spill]] (!%p365_p9) }
  0x13   : > { %s1720_s2 = sld [smem:[#allocation7_spill]] (!%p365_p9)  ;;  %s1244_s29 = sshll.u32 (!%p365_p9), %s1495_s25, 3 }
  0x17   : > { %s406_s15 = scalar_select %p405_p10, %s1495_s25, 1  ;;  %vm413_vm0 = vcmask 261120   ;;  %v1408_v2 = vmov 32.0   ;;  %v1247_v31 = vld [vmem:[%s1703_s3] sm:$0xff]  ;;  %v1248_v32 = vld [vmem:[%s1703_s3 + $0x8] sm:$0xff]  ;;  %v1249_v33 = vld [vmem:[%s1703_s3 + $0x10] sm:$0xff]  ;;  %v630_v60 = vlaneseq }
  0x18   : > { %1320 = vrcp.f32 %v1408_v2  ;;  %v1313_v23 = vld [vmem:[%s1719_s1] ss:$0 sm:$0xff]  ;;  %v1250_v38 = vld [vmem:[%s1703_s3 + $0x18] sm:$0xff]  ;;  %vm639_vm5 = vcmask 1043456   ;;  %v1252_v49 = vld [vmem:[%s1703_s3 + $0x28] sm:$0xff]  ;;  %vm635_vm6 = vcmask 64512  }
  0x19   : > { %s1154_s16 = sshll.u32 %s406_s15, 3  ;;  %v1314_v26 = vld [vmem:[%s1720_s2] ss:$0 sm:$0xff]  ;;  %v631_v61 = vshrl.u32 %v630_v60, 7  ;;  %v633_v62 = vand.u32 127, %v630_v60 }
  0x1a   : > { %s408_s19 = scalar_lea.vmem %s1718_s0, %s1154_s16  ;;  %s402_s0 = sand.u32 1, %s1398_s22  }
  0x1b   : > { %v1527_v0 = vld [vmem:[%s408_s19] sm:$0xff]  ;;  %vm634_vm7 = vcmp.le.s32.totalorder %v633_v62, %v631_v61  ;;  %s1153_s28 = sshll.u32 %s402_s0, 3  ;;  %s1085_s19 = scalar_lea.hbm %s1712_s12, %s1244_s29 }
  0x1c   : > { %v414_v1 = vsel %vm413_vm0, %v1527_v0, 0.0  ;;  %s404_s20 = scalar_lea.vmem [#allocation2], %s1153_s28  ;;  %s1089_s1 = sshll.u32 %s1085_s19, 4  ;;  %s1090_s1 = int_to_ptr.hbm [resolvable:$true] %s1089_s1 }
  0x1d   : > { %415 = vadd.xlane.f32.xlu0 %v414_v1  ;;  %s1087_s26 = sshll.u32 %s404_s20, 4  ;;  %s1075_s25 = scalar_lea.sflag [#allocation3], %s402_s0  ;;  %s1088_s26 = int_to_ptr.vmem [resolvable:$true] %s1087_s26 }
  0x1e   : > { %v1321_v3 = vpop.eup %1320  ;;  %s1358_s2 = sshra.s32 %s1090_s1, 4  ;;  %s1364_s28 = scalar_lea.hbm %s1712_s12, 16  ;;  %s1359_s2 = int_to_ptr.hbm [resolvable:$true] %s1358_s2 }
  0x1f   : > { %v418_v4 = vmul.f32 32.0, %v1321_v3  ;;  %vm422_vm1 = vweird.f32 %v1321_v3  ;;  %s1360_s15 = scalar_lea.hbm %s1359_s2, 8  ;;  %p1365_p0 = scmp.lt.s32.totalorder %s1359_s2, %s1712_s12 }
  0x20   : > { %p1361_p11 = scmp.ne.s32.totalorder %s1359_s2, %s1360_s15  ;;  %p1366_p1 = scmp.lt.s32.totalorder %s1364_s28, %s1360_s15 }
  0x21   : > { %v419_v5 = vsub.f32 1.0, %v418_v4 }
  0x22   : > { %p1362_p12 = pnand %p1361_p11, %p1512_p5  ;;  %p1367_p2 = por %p1366_p1, %p1365_p0 }
  0x23   : > { %v420_v6 = vmul.f32 %v1321_v3, %v419_v5 }
  0x24   : > { %p1363_p13 = pneg %p1362_p12 }
  0x25   : > { %v421_v7 = vadd.f32 %v1321_v3, %v420_v6 }
  0x26   : > { %p1368_p3 = pnand %p1367_p2, %p1363_p13 }
  0x27   : > { %v1531_v8 = vsel %vm422_vm1, %v1321_v3, %v421_v7 }
  0x90   : > { %v416_v9 = vpop.xlane.xlu0 %415 }
  0x91   : > { %v424_v10 = vmul.f32 %v1531_v8, %v416_v9 }
  0x93   : > { %v425_v11 = vsub.f32 %v1527_v0, %v424_v10 }
  0x95   : > { %v426_v12 = vmul.f32 %v425_v11, %v425_v11 }
  0x97   : > { %v427_v13 = vsel %vm413_vm0, %v426_v12, 0.0 }
  0x98   : > { %428 = vadd.xlane.f32.xlu0 %v427_v13 }
 0x10b   : > { %v429_v14 = vpop.xlane.xlu0 %428 }
 0x10c   : > { %v430_v15 = vmul.f32 %v429_v14, %v1531_v8 }
 0x10e   : > { %v431_v16 = vadd.f32 1e-05, %v430_v15 }
 0x110   : > { %1322 = vrsqrt.f32 %v431_v16  ;;  %vm438_vm3 = vweird.f32 %v431_v16 }
 0x116   : > { %v1323_v17 = vpop.eup %1322 }
 0x117   : > { %v433_v18 = vmul.f32 %v1323_v17, %v431_v16  ;;  %vm439_vm2 = vweird.f32 %v1323_v17 }
 0x118   : > { %vm440_vm4 = vmor %vm438_vm3, %vm439_vm2 }
 0x119   : > { %v434_v19 = vmul.f32 %v1323_v17, %v433_v18 }
 0x11b   : > { %v435_v20 = vmul.f32 0.5, %v434_v19  ;;  %v1251_v19 = vld [vmem:[%s1703_s3 + $0x20] sm:$0xff] }
 0x11d   : > { %v436_v21 = vsub.f32 1.5, %v435_v20 }
 0x11f   : > { %v437_v22 = vmul.f32 %v1323_v17, %v436_v21 }
 0x121   : > { %v441_v24 = vsel %vm440_vm4, %v1323_v17, %v437_v22 }
 0x122   : > { %v442_v25 = vmul.f32 %v441_v24, %v425_v11 }
 0x124   : > { %v446_v27 = vmul.f32 %v1313_v23, %v442_v25 }
 0x126   : > { %v450_v28 = vadd.f32 %v1314_v26, %v446_v27 }
 0x128   : > { %v451_v29 = vpack.c.bf16 %v450_v28, %v450_v28 }
 0x12a   : > { %v513_v30 = vsel %vm413_vm0, %v451_v29, 0 }
 0x12b   : > { %522 = vmatpush.bf16.xpose.msra.mxu0 %v513_v30  ;;  %1265 = vmatpush.bf16.xpose.msra.mxu3 %v513_v30 }
 0x132   : > { %1179 = vmatmul.msk.bf16.vlgmr.msra.gmra.mxu0 %vm413_vm0, %v1247_v31  ;;  %1184 = vmatmul.msk.bf16.vlgmr.msra.gmra.mxu3 %vm413_vm0, %v1252_v49 }
 0x142   : > { %1180 = vmatmul.msk.bf16.gmra.mxu0 %vm413_vm0, %v1248_v32 }
 0x152   : > { %1181 = vmatmul.msk.bf16.gmra.mxu0 %vm413_vm0, %v1249_v33 }
 0x162   : > { %1182 = vmatmul.msk.bf16.gmra.mxu0 %vm413_vm0, %v1250_v38 }
 0x172   : > { %1183 = vmatmul.msk.bf16.gmra.mxu0 %vm413_vm0, %v1251_v19 }
 0x1af   : > { %v524_v34 = vpop.f32.mrf.mxu0 }
 0x1b0   : > { %v554_v36 = vpack.c.bf16 %v524_v34, %v524_v34 }
 0x1b5   : > { %v1574_v3 = vpop.f32.mrf.mxu3 }
 0x1b7   : > { %v526_v35 = vpop.f32.mrf.mxu0 }
 0x1b8   : > { %v555_v37 = vpack.c.bf16 %v526_v35, %v526_v35 }
 0x1ba   : > { %1307 = vxpose.binary.xlu1.c.b16.start.end [1/2] (short) (narrow) %v555_v37, %v554_v36, 16 }
 0x1bd   : > { %v1576_v5 = vpop.f32.mrf.mxu3 }
 0x1bf   : > { %v529_v39 = vpop.f32.mrf.mxu0 }
 0x1c0   : > { %v556_v41 = vpack.c.bf16 %v529_v39, %v529_v39 }
 0x1c7   : > { %v531_v40 = vpop.f32.mrf.mxu0 }
 0x1c8   : > { %v557_v42 = vpack.c.bf16 %v531_v40, %v531_v40 }
 0x1ca   : > { %1310 = vxpose.binary.xlu1.c.b16.start.end [1/2] (short) (narrow) %v557_v42, %v556_v41, 16 }
 0x1cf   : > { %v534_v43 = vpop.f32.mrf.mxu0 }
 0x1d0   : > { %v558_v44 = vpack.c.bf16 %v534_v43, %v534_v43 }
 0x1d2   : > { %v641_v45 = vsel %vm639_vm5, %v558_v44, 0 }
 0x1d3   : > { %650 = vmatpush.bf16.msra.mxu1 %v641_v45 }
 0x1d7   : > { %v536_v46 = vpop.f32.mrf.mxu0 }
 0x1d8   : > { %v559_v47 = vpack.c.bf16 %v536_v46, %v536_v46 }
 0x1da   : > { %v660_v48 = vsel %vm639_vm5, %v559_v47, 0 }
 0x1db   : > { %669 = vmatpush.bf16.msra.mxu2 %v660_v48 }
 0x1df   : > { %v539_v50 = vpop.f32.mrf.mxu0 }
 0x1e0   : > { %v560_v51 = vpack.c.bf16 %v539_v50, %v539_v50 }
 0x1e2   : > { %v679_v53 = vsel %vm639_vm5, %v560_v51, 0 }
 0x1e3   : > { %688 = vmatpush.bf16.msrb.mxu3 %v679_v53 }
 0x1e7   : > { %v541_v52 = vpop.f32.mrf.mxu0 }
 0x1e8   : > { %v561_v54 = vpack.c.bf16 %v541_v52, %v541_v52 }
 0x1ea   : > { %v698_v55 = vsel %vm639_vm5, %v561_v54, 0 }
 0x1eb   : > { %707 = vmatpush.bf16.msrb.mxu1 %v698_v55 }
 0x1ef   : > { %v544_v46 = vpop.f32.mrf.mxu0 }
 0x1f0   : > { %v562_v47 = vpack.c.bf16 %v544_v46, %v544_v46 }
 0x1f7   : > { %v546_v55 = vpop.f32.mrf.mxu0 }
 0x266   : > { %v1308_v56 = vpop.trf.xlu1 }
 0x267   : > { %1185 = vmatmul.msk.bf16.vlgmr.msra.gmra.mxu1 %vm635_vm6, %v1308_v56 }
 0x26e   : > { %v1309_v57 = vpop.trf.xlu1 }
 0x26f   : > { %1186 = vmatmul.msk.bf16.vlgmr.msra.gmra.mxu2 %vm635_vm6, %v1309_v57 }
 0x276   : > { %v1311_v58 = vpop.trf.xlu1 }
 0x277   : > { %1187 = vmatmul.msk.bf16.vlgmr.msrb.gmra.mxu3 %vm635_vm6, %v1311_v58  ;;  %v563_v58 = vpack.c.bf16 %v546_v55, %v546_v55  ;;  %v1261_v55 = vld [vmem:[%s1710_s10 + $0x20] sm:$0xff] }
 0x27e   : > { %v1312_v59 = vpop.trf.xlu1 }
 0x27f   : > { %1188 = vmatmul.msk.bf16.vlgmr.msrb.gmra.mxu1 %vm635_vm6, %v1312_v59 }
 0x2e4   : > { %v652_v63 = vpop.f32.mrf.mxu1 }
 0x2e5   : > { %v715_v1 = vsel %vm634_vm7, %v652_v63, -1e+30 }
 0x2e6   : > { %v719_v2 = vsel %vm635_vm6, %v715_v1, -inf }
 0x2e7   : > { %720 = vmax.xlane.f32.xlu2 %v719_v2  ;;  %v565_v2 = vpack.c.bf16 %v1576_v5, %v1576_v5 }
 0x2ec   : > { %v654_v4 = vpop.f32.mrf.mxu1 }
 0x2f2   : > { %v671_v6 = vpop.f32.mrf.mxu2 }
 0x2f3   : > { %v716_v7 = vsel %vm634_vm7, %v671_v6, -1e+30  ;;  %v1254_v6 = vld [vmem:[%s1704_s4 + $0x8] sm:$0xff] }
 0x2f4   : > { %v722_v9 = vsel %vm635_vm6, %v716_v7, -inf }
 0x2f5   : > { %723 = vmax.xlane.f32.xlu2 %v722_v9 }
 0x2fa   : > { %v673_v10 = vpop.f32.mrf.mxu2  ;;  %v690_v11 = vpop.f32.mrf.mxu3 }
 0x2fb   : > { %v717_v12 = vsel %vm634_vm7, %v690_v11, -1e+30 }
 0x2fc   : > { %v709_v13 = vpop.f32.mrf.mxu1  ;;  %v725_v14 = vsel %vm635_vm6, %v717_v12, -inf }
 0x2fd   : > { %v718_v15 = vsel %vm634_vm7, %v709_v13, -1e+30  ;;  %726 = vmax.xlane.f32.xlu2 %v725_v14 }
 0x2fe   : > { %v728_v16 = vsel %vm635_vm6, %v718_v15, -inf }
 0x2ff   : > { %729 = vmax.xlane.f32.xlu0 %v728_v16 }
 0x302   : > { %v692_v17 = vpop.f32.mrf.mxu3 }
 0x304   : > { %v711_v18 = vpop.f32.mrf.mxu1 }
 0x35a   : > { %v721_v20 = vpop.xlane.xlu2 %720 }
 0x35b   : > { %v731_v21 = vsub.f32 %v715_v1, %v721_v20  ;;  %v564_v1 = vpack.c.bf16 %v1574_v3, %v1574_v3 }
 0x35d   : > { %v735_v22 = vmul.f32 1.442695, %v731_v21 }
 0x35f   : > { %1324 = vpow2.f32 %v735_v22 }
 0x365   : > { %v1325_v23 = vpop.eup %1324 }
 0x366   : > { %v743_v24 = vsel %vm635_vm6, %v1325_v23, 0.0 }
 0x367   : > { %744 = vadd.xlane.f32.xlu0 %v743_v24 }
 0x368   : > { %v724_v25 = vpop.xlane.xlu2 %723 }
 0x369   : > { %v732_v26 = vsub.f32 %v716_v7, %v724_v25  ;;  %v1253_v7 = vld [vmem:[%s1704_s4] sm:$0xff] }
 0x36a   : > { %v1315_v25 = vld [vmem:[%s1705_s5] ss:$0 sm:$0xff] }
 0x36b   : > { %v737_v27 = vmul.f32 1.442695, %v732_v26 }
 0x36d   : > { %1326 = vpow2.f32 %v737_v27 }
 0x370   : > { %v727_v28 = vpop.xlane.xlu2 %726 }
 0x371   : > { %v733_v29 = vsub.f32 %v717_v12, %v727_v28 }
 0x372   : > { %v730_v30 = vpop.xlane.xlu0 %729 }
 0x373   : > { %v1327_v31 = vpop.eup %1326  ;;  %v739_v32 = vmul.f32 1.442695, %v733_v29  ;;  %v734_v33 = vsub.f32 %v718_v15, %v730_v30 }
 0x374   : > { %v746_v34 = vsel %vm635_vm6, %v1327_v31, 0.0 }
 0x375   : > { %1328 = vpow2.f32 %v739_v32  ;;  %v741_v35 = vmul.f32 1.442695, %v734_v33  ;;  %747 = vadd.xlane.f32.xlu1 %v746_v34 }
 0x377   : > { %1330 = vpow2.f32 %v741_v35 }
 0x37b   : > { %v1329_v36 = vpop.eup %1328 }
 0x37c   : > { %v749_v37 = vsel %vm635_vm6, %v1329_v36, 0.0 }
 0x37d   : > { %v1331_v38 = vpop.eup %1330  ;;  %750 = vadd.xlane.f32.xlu0 %v749_v37  ;;  %v1264_v37 = vld [vmem:[%s1710_s10 + $0x38] sm:$0xff] }
 0x37e   : > { %v752_v39 = vsel %vm635_vm6, %v1331_v38, 0.0 }
 0x37f   : > { %753 = vadd.xlane.f32.xlu2 %v752_v39 }
 0x3da   : > { %v745_v40 = vpop.xlane.xlu0 %744 }
 0x3db   : > { %1332 = vrcp.f32 %v745_v40  ;;  %v1263_v40 = vld [vmem:[%s1710_s10 + $0x30] sm:$0xff] }
 0x3e1   : > { %v1333_v41 = vpop.eup %1332 }
 0x3e2   : > { %v759_v42 = vmul.f32 %v1333_v41, %v1325_v23 }
 0x3e4   : > { %v763_v43 = vpack.c.bf16 %v759_v42, %v759_v42 }
 0x3e6   : > { %v771_v44 = vsel %vm635_vm6, %v763_v43, 0 }
 0x3e7   : > { %780 = vmatpush.bf16.xpose.msrb.mxu2 %v771_v44 }
 0x3e8   : > { %v748_v45 = vpop.xlane.xlu1 %747 }
 0x3e9   : > { %1334 = vrcp.f32 %v748_v45 }
 0x3ee   : > { %1189 = vmatmul.msk.bf16.vlgmr.msrb.gmra.mxu2 %vm635_vm6, %v562_v47 }
 0x3ef   : > { %v1335_v48 = vpop.eup %1334 }
 0x3f0   : > { %v751_v49 = vpop.xlane.xlu0 %750  ;;  %v760_v50 = vmul.f32 %v1335_v48, %v1327_v31 }
 0x3f1   : > { %1336 = vrcp.f32 %v751_v49 }
 0x3f2   : > { %v754_v51 = vpop.xlane.xlu2 %753  ;;  %v764_v52 = vpack.c.bf16 %v760_v50, %v760_v50  ;;  %v1317_v50 = vld [vmem:[%s1707_s7] ss:$0 sm:$0xff] }
 0x3f3   : > { %1338 = vrcp.f32 %v754_v51 }
 0x3f4   : > { %v790_v53 = vsel %vm635_vm6, %v764_v52, 0 }
 0x3f5   : > { %799 = vmatpush.bf16.xpose.msra.mxu3 %v790_v53 }
 0x3f7   : > { %v1337_v54 = vpop.eup %1336 }
 0x3f8   : > { %v761_v56 = vmul.f32 %v1337_v54, %v1329_v36  ;;  %v1256_v36 = vld [vmem:[%s1708_s8 + $0x8] sm:$0xff] }
 0x3f9   : > { %v1339_v57 = vpop.eup %1338  ;;  %v1262_v54 = vld [vmem:[%s1710_s10 + $0x28] sm:$0xff] }
 0x3fa   : > { %v765_v59 = vpack.c.bf16 %v761_v56, %v761_v56  ;;  %v762_v60 = vmul.f32 %v1339_v57, %v1331_v38  ;;  %v1260_v56 = vld [vmem:[%s1710_s10 + $0x18] sm:$0xff]  ;;  %v1259_v57 = vld [vmem:[%s1710_s10 + $0x10] sm:$0xff] }
 0x3fc   : > { %1190 = vmatmul.msk.bf16.vlgmr.msra.gmra.mxu3 %vm635_vm6, %v563_v58  ;;  %v809_v61 = vsel %vm635_vm6, %v765_v59, 0  ;;  %v766_v62 = vpack.c.bf16 %v762_v60, %v762_v60  ;;  %v1258_v58 = vld [vmem:[%s1710_s10 + $0x8] sm:$0xff]  ;;  %v1257_v59 = vld [vmem:[%s1710_s10] sm:$0xff] }
 0x3fd   : > { %818 = vmatpush.bf16.xpose.msra.mxu1 %v809_v61  ;;  %904 = vmatpush.bf16.msrb.mxu3 %v1254_v6  ;;  %v1318_v60 = vld [vmem:[%s1709_s9] ss:$0 sm:$0xff] }
 0x3fe   : > { %v828_v63 = vsel %vm635_vm6, %v766_v62, 0 }
 0x3ff   : > { %837 = vmatpush.bf16.xpose.msra.mxu2 %v828_v63 }
 0x401   : > { %905 = vmatpush.bf16.msrb.mxu3 %v1253_v7 }
 0x404   : > { %1191 = vmatmul.msk.bf16.vlgmr.msra.gmra.mxu1 %vm635_vm6, %v564_v1 }
 0x405   : > { %974 = vmatpush.bf16.msrb.mxu1 %v1256_v36 }
 0x406   : > { %1192 = vmatmul.msk.bf16.vlgmr.msra.gmra.mxu2 %vm635_vm6, %v565_v2 }
 0x407   : > { %1059 = vmatpush.bf16.msrb.mxu2 %v1264_v37 }
 0x40b   : > { %1060 = vmatpush.bf16.msrb.mxu2 %v1263_v40 }
 0x40f   : > { %1061 = vmatpush.bf16.msrb.mxu2 %v1262_v54 }
 0x413   : > { %1062 = vmatpush.bf16.msrb.mxu2 %v1261_v55 }
 0x417   : > { %1063 = vmatpush.bf16.msrb.mxu2 %v1260_v56 }
 0x41b   : > { %1064 = vmatpush.bf16.msrb.mxu2 %v1259_v57 }
 0x41f   : > { %1065 = vmatpush.bf16.msrb.mxu2 %v1258_v58 }
 0x423   : > { %1066 = vmatpush.bf16.msrb.mxu2 %v1257_v59 }
 0x471   : > { %v782_v4 = vpop.f32.mrf.mxu2 }
 0x472   : > { %v843_v3 = vpack.c.bf16 %v782_v4, %v782_v4 }
 0x474   : > { %v851_v12 = vunpack.c.l.b16 %v843_v3 }
 0x479   : > { %v784_v9 = vpop.f32.mrf.mxu2 }
 0x47f   : > { %v801_v10 = vpop.f32.mrf.mxu3 }
 0x480   : > { %v844_v11 = vpack.c.bf16 %v801_v10, %v801_v10 }
 0x481   : > { %v820_v5 = vpop.f32.mrf.mxu1 }
 0x482   : > { %v852_v13 = vunpack.c.l.b16 %v844_v11  ;;  %v845_v19 = vpack.c.bf16 %v820_v5, %v820_v5 }
 0x484   : > { %v855_v14 = vpack.c.b16 %v852_v13, %v851_v12  ;;  %v853_v22 = vunpack.c.l.b16 %v845_v19  ;;  %v1319_v12 = vld [vmem:[%s1711_s11] ss:$0 sm:$0xff] }
 0x486   : > { %859 = vxpose.xlu2.c.b16.start [1/2] (short) (narrow) %v855_v14, 16 }
 0x487   : > { %v803_v15 = vpop.f32.mrf.mxu3 }
 0x489   : > { %v822_v16 = vpop.f32.mrf.mxu1  ;;  %v839_v17 = vpop.f32.mrf.mxu2 }
 0x48a   : > { %v846_v18 = vpack.c.bf16 %v839_v17, %v839_v17 }
 0x48c   : > { %v854_v20 = vunpack.c.l.b16 %v846_v18 }
 0x48e   : > { %v856_v23 = vpack.c.b16 %v854_v20, %v853_v22 }
 0x491   : > { %v841_v21 = vpop.f32.mrf.mxu2 }
 0x496   : > { %860 = vxpose.xlu2.c.b16.end [2/2] (short) (narrow) %v856_v23, 16 }
 0x527   : > { %v867_v24 = vpop.trf.xlu2 }
 0x528   : > { %1201 = vmatmul.msk.bf16.vlgmr.msrb.gmra.mxu3 %vm413_vm0, %v867_v24 }
 0x5ab   : > { %v907_v26 = vpop.f32.mrf.mxu3 }
 0x5ac   : > { %v908_v27 = vadd.f32 %v1315_v25, %v907_v26 }
 0x5ae   : > { %v1615_v28 = vadd.f32 %v908_v27, %v1527_v0  ;;  %v1255_v0 = vld [vmem:[%s1708_s8] sm:$0xff] }
 0x5af   : > { %975 = vmatpush.bf16.msrb.mxu1 %v1255_v0 }
 0x5b0   : > { %v914_v29 = vsel %vm413_vm0, %v1615_v28, 0.0 }
 0x5b1   : > { %915 = vadd.xlane.f32.xlu0 %v914_v29 }
 0x5b3   : > { %v909_v30 = vpop.f32.mrf.mxu3 }
 0x624   : > { %v916_v31 = vpop.xlane.xlu0 %915 }
 0x625   : > { %v917_v32 = vmul.f32 %v916_v31, %v1531_v8 }
 0x627   : > { %v918_v33 = vsub.f32 %v1615_v28, %v917_v32 }
 0x629   : > { %v919_v34 = vmul.f32 %v918_v33, %v918_v33 }
 0x62b   : > { %v920_v35 = vsel %vm413_vm0, %v919_v34, 0.0 }
 0x62c   : > { %921 = vadd.xlane.f32.xlu0 %v920_v35 }
 0x69f   : > { %v922_v38 = vpop.xlane.xlu0 %921 }
 0x6a0   : > { %v923_v39 = vmul.f32 %v922_v38, %v1531_v8  ;;  %v1316_v8 = vld [vmem:[%s1706_s6] ss:$0 sm:$0xff] }
 0x6a2   : > { %v924_v41 = vadd.f32 1e-05, %v923_v39 }
 0x6a4   : > { %1340 = vrsqrt.f32 %v924_v41  ;;  %vm931_vm9 = vweird.f32 %v924_v41 }
 0x6aa   : > { %v1341_v42 = vpop.eup %1340 }
 0x6ab   : > { %v926_v43 = vmul.f32 %v1341_v42, %v924_v41  ;;  %vm932_vm8 = vweird.f32 %v1341_v42 }
 0x6ac   : > { %vm933_vm10 = vmor %vm931_vm9, %vm932_vm8 }
 0x6ad   : > { %v927_v44 = vmul.f32 %v1341_v42, %v926_v43 }
 0x6af   : > { %v928_v45 = vmul.f32 0.5, %v927_v44 }
 0x6b1   : > { %v929_v46 = vsub.f32 1.5, %v928_v45 }
 0x6b3   : > { %v930_v47 = vmul.f32 %v1341_v42, %v929_v46 }
 0x6b5   : > { %v934_v48 = vsel %vm933_vm10, %v1341_v42, %v930_v47 }
 0x6b6   : > { %v935_v49 = vmul.f32 %v934_v48, %v918_v33 }
 0x6b8   : > { %v939_v51 = vmul.f32 %v1316_v8, %v935_v49 }
 0x6ba   : > { %v943_v52 = vadd.f32 %v1317_v50, %v939_v51 }
 0x6bc   : > { %v944_v53 = vpack.c.bf16 %v943_v52, %v943_v52 }
 0x6be   : > { %1210 = vmatmul.msk.bf16.vlgmr.msrb.gmra.mxu1 %vm413_vm0, %v944_v53 }
 0x73b   : > { %v977_v61 = vpop.f32.mrf.mxu1 }
 0x73c   : > { %v978_v62 = vadd.f32 %v1318_v60, %v977_v61 }
 0x73e   : > { %v982_v63 = vmul.f32 0.044715, %v978_v62  ;;  %v981_v3 = vmul.f32 0.5, %v978_v62 }
 0x740   : > { %v983_v1 = vmul.f32 %v982_v63, %v978_v62 }
 0x742   : > { %v984_v2 = vmul.f32 %v983_v1, %v978_v62 }
 0x743   : > { %v979_v4 = vpop.f32.mrf.mxu1 }
 0x744   : > { %v985_v6 = vadd.f32 %v984_v2, %v978_v62 }
 0x746   : > { %v986_v7 = vmul.f32 0.7978845, %v985_v6 }
 0x748   : > { %1342 = vtanh.f32 %v986_v7 }
 0x74e   : > { %v1343_v9 = vpop.eup %1342 }
 0x74f   : > { %v988_v10 = vadd.f32 1.0, %v1343_v9 }
 0x751   : > { %v989_v11 = vmul.f32 %v988_v10, %v981_v3 }
 0x753   : > { %v990_v5 = vpack.c.bf16 %v989_v11, %v989_v11 }
 0x755   : > { %1067 = vmatmul.bf16.vlgmr.msrb.gmra.mxu2 %v990_v5 }
 0x7d8   : > { %v1068_v13 = vpop.f32.mrf.mxu2 }
 0x7d9   : > { %v1069_v14 = vadd.f32 %v1319_v12, %v1068_v13 }
 0x7db   : > { %v1072_v15 = vadd.f32 %v1069_v14, %v1615_v28 }
 0x7dd   : > { %1073 = vst.msk [vmem:[%s404_s20] sm:$0xff] %vm413_vm0, %v1072_v15 }
 0x7de   : > { %1371 = shalt.err (!%p1368_p3)
}
 0x7df   : > { %1266 = dma.vmem_to_hbm [thread:$0]  (%p1512_p5), %s1088_s26, 128, %s1090_s1, %s1075_s25  }
 0x7e0   : > { %v1070_v16 = vpop.f32.mrf.mxu2 }
 0x7e1 PF: > { %p1272_p4 = scmp.ge.s32.totalorder %s1406_s24, 2  ;;  %s1101_s0 = sand.u32 1, %s1394_s21  }
 0x7e2   : > { %s1102_s19 = scalar_lea.sflag [#allocation3], %s1101_s0 }
 0x7e3   : > { %p1269_p7 = pnand %p1272_p4, %p1516_p6 }
 0x7e5   : > { %p1270_p8 = pneg %p1269_p7 }
 0x7e7   : > { %1389 = dma.done.wait (%p1270_p8), %s1102_s19, 128  }
 0x7e8   : > { %1391 = vsyncadd (%p1270_p8), %s1102_s19, 4294967168  ;;  %p22_p9 = scmp.ge.s32.totalorder %s1499_s27, 4   ;;  %s1721_s21 = smov %s1398_s22 }
 0x7e9   : > { %s1722_s22 = smov %s1402_s23  ;;  %s1723_s23 = smov %s1510_s30 }
 0x7ea   : > { %s1724_s24 = smov %s1499_s27  ;;  %24 = sbr.rel (!%p22_p9) target bundleno = 7 (0x7), region = 103 }
 0x7ef   :  { %1108 = vsyncpa [#allocation3], 1 }
 0x7f0   :  { %1110 = vsyncpa [#allocation3 + $0x1], 1 }

</bundles_post_ra>
